<compile_context>
chip_gen: v5e
topology: v5e:2x2
jax: 0.10.0
libtpu: 0.0.40
codegen_flags: <defaults>
</compile_context>

<pallas_src>
import itertools
import math
from collections import Counter
from functools import partial

import jax
import jax.numpy as jnp
from jax.experimental import pallas as pl
from jax.experimental.pallas import tpu as pltpu


def taylor_terms(dim, order):
    """Exact replica of the module's __init__ index bookkeeping (trace-time)."""
    indc = Counter(
        tuple(sorted(t))
        for o in range(order + 1)
        for t in itertools.product(*[range(dim) for _ in range(o)])
    )
    inds = sorted(indc)  # same ordering as sorted(self.indc) in forward()
    coeffs = [1.0 * indc[ind] / math.factorial(len(ind)) for ind in inds]
    exps = [[ind.count(d) for d in range(dim)] for ind in inds]
    return exps, coeffs


def make_taylor_kernel(exps, coeffs, dim):
    """Kernel body for one lane-dense (dim, TN) -> (nterms, TN) tile."""
    # Max exponent actually needed per input dimension (skip unused powers).
    max_pow_d = [max(e[d] for e in exps) for d in range(dim)]

    def kernel(x_ref, o_ref):
        x = x_ref[...].astype(jnp.float32)          # (dim, TN), full-lane rows
        tn = x.shape[1]

        # Shared power table: pow_tab[d][p] = x_d ** p, computed once per tile.
        pow_tab = []
        for d in range(dim):
            xd = x[d : d + 1, :]                    # (1, TN)
            pd = [None, xd]
            for _ in range(2, max_pow_d[d] + 1):
                pd.append(pd[-1] * xd)
            pow_tab.append(pd)

        # One full-lane row write per term (static row index, unmasked lanes).
        for t, (e, c) in enumerate(zip(exps, coeffs)):
            term = None
            for d in range(dim):
                p = e[d]
                if p > 0:
                    f = pow_tab[d][p]
                    term = f if term is None else term * f
            if term is None:                        # empty multi-index -> constant
                row = jnp.full((1, tn), c, dtype=jnp.float32)
            elif c != 1.0:
                row = c * term
            else:
                row = term
            o_ref[pl.ds(t, 1), :] = row.astype(o_ref.dtype)

    return kernel


@partial(jax.jit, static_argnames=("order", "lane_tile"))
def taylor_forward(x, order, lane_tile=1024):
    dim = x.shape[-1]
    exps, coeffs = taylor_terms(dim, order)
    nterms = len(coeffs)

    lead = x.shape[:-1]
    n = 1
    for s in lead:
        n *= s

    # Channel-major view: rows of x become full-lane vectors in the kernel.
    xt = jnp.transpose(x.reshape(n, dim))           # (dim, n)

    # Lane tile: multiple of 128, no larger than the 128-rounded row count.
    n128 = pl.cdiv(n, 128) * 128
    tn = max(128, (min(int(lane_tile), n128) // 128) * 128)
    n_pad = pl.cdiv(n, tn) * tn
    if n_pad != n:
        # Pad only the remainder tile (cheap: input is dim-wide, << output).
        xt = jnp.pad(xt, ((0, 0), (0, n_pad - n)))

    kernel = make_taylor_kernel(exps, coeffs, dim)

    muls_per_col = sum(sum(1 for p in e if p > 0) for e in exps) + nterms
    cost = pl.CostEstimate(
        flops=int(muls_per_col) * int(n_pad),
        transcendentals=0,
        bytes_accessed=int(n_pad) * (dim + nterms) * x.dtype.itemsize,
    )

    out = pl.pallas_call(
        kernel,
        out_shape=jax.ShapeDtypeStruct((nterms, n_pad), x.dtype),
        grid=(n_pad // tn,),
        in_specs=[pl.BlockSpec((dim, tn), lambda i: (0, i))],
        out_specs=pl.BlockSpec((nterms, tn), lambda i: (0, i)),
        compiler_params=pltpu.CompilerParams(dimension_semantics=("parallel",)),
        cost_estimate=cost,
    )(xt)

    # Back to the reference (..., nterms) layout (transpose done outside kernel,
    # fused by XLA with the slice under jit).
    return jnp.transpose(out[:, :n]).reshape(lead + (nterms,))


def taylor_reference(x, order):
    """Pure-JAX reference mirroring the PyTorch forward literally."""
    dim = x.shape[-1]
    exps, coeffs = taylor_terms(dim, order)
    cols = []
    for e, c in zip(exps, coeffs):
        term = jnp.prod(
            jnp.stack([x[..., d] ** e[d] for d in range(dim)], axis=0), axis=0
        )
        cols.append(jnp.expand_dims(c * term, -1))
    return jnp.concatenate(cols, axis=-1)


if __name__ == "__main__":
    key = jax.random.PRNGKey(0)
    k1, k2, k3 = jax.random.split(key, 3)

    # dim=3, order=2 (nterms=10): small input, exercises the remainder tile.
    x_a = jax.random.normal(k1, (2, 8, 3), dtype=jnp.float32)
    out_a = jax.block_until_ready(taylor_forward(x_a, order=2))
    ref_a = taylor_reference(x_a, order=2)
    assert out_a.shape == ref_a.shape, (out_a.shape, ref_a.shape)
    assert jnp.allclose(out_a, ref_a, atol=1e-5, rtol=1e-5), "mismatch (case A)"

    # dim=3, order=2: larger input -> multiple lane tiles (grid > 1, megacore).
    x_b = jax.random.normal(k2, (4, 256, 3), dtype=jnp.float32)
    out_b = jax.block_until_ready(taylor_forward(x_b, order=2, lane_tile=512))
    ref_b = taylor_reference(x_b, order=2)
    assert jnp.allclose(out_b, ref_b, atol=1e-5, rtol=1e-5), "mismatch (case B)"

    # dim=2, order=3: exercises the shared power table up to x**3.
    x_c = jax.random.normal(k3, (8, 16, 2), dtype=jnp.float32)
    out_c = jax.block_until_ready(taylor_forward(x_c, order=3))
    ref_c = taylor_reference(x_c, order=3)
    assert jnp.allclose(out_c, ref_c, atol=1e-5, rtol=1e-5), "mismatch (case C)"

    print("KERNEL_OK")
</pallas_src>

<mosaic_0001>
module attributes {stable_mosaic.version = 11 : i64} {
  func.func @kernel(%arg0: i32, %arg1: memref<3x128xf32, #tpu.memory_space<vmem>>, %arg2: memref<10x128xf32, #tpu.memory_space<vmem>>) attributes {dimension_semantics = [#tpu.dimension_semantics<parallel>], iteration_bounds = array<i64: 1>, scalar_prefetch = 0 : i64, scratch_operands = 0 : i64, tpu.core_type = #tpu.core_type<tc>, window_params = [{transform_indices = @transform_0, window_bounds = array<i64: 3, 128>}, {transform_indices = @transform_1, window_bounds = array<i64: 10, 128>}]} {
    %c0 = arith.constant 0 : index
    %c0_0 = arith.constant 0 : index
    %0 = vector.load %arg1[%c0, %c0_0] : memref<3x128xf32, #tpu.memory_space<vmem>>, vector<3x128xf32>
    %1 = vector.extract_strided_slice %0 {offsets = [0, 0], sizes = [1, 128], strides = [1, 1]} : vector<3x128xf32> to vector<1x128xf32>
    %2 = arith.mulf %1, %1 : vector<1x128xf32>
    %3 = vector.extract_strided_slice %0 {offsets = [1, 0], sizes = [1, 128], strides = [1, 1]} : vector<3x128xf32> to vector<1x128xf32>
    %4 = arith.mulf %3, %3 : vector<1x128xf32>
    %5 = vector.extract_strided_slice %0 {offsets = [2, 0], sizes = [1, 128], strides = [1, 1]} : vector<3x128xf32> to vector<1x128xf32>
    %6 = arith.mulf %5, %5 : vector<1x128xf32>
    %cst = arith.constant 1.000000e+00 : f32
    %7 = vector.broadcast %cst : f32 to vector<1x128xf32>
    %c0_1 = arith.constant 0 : index
    %c0_2 = arith.constant 0 : index
    %8 = vector.load %arg2[%c0_1, %c0_2] : memref<10x128xf32, #tpu.memory_space<vmem>>, vector<1x128xf32>
    tpu.vector_store %arg2[%c0_1, %c0_2], %7 {strides = array<i32>} : memref<10x128xf32, #tpu.memory_space<vmem>>, vector<1x128xf32>,
    %c1 = arith.constant 1 : index
    %c0_3 = arith.constant 0 : index
    %9 = vector.load %arg2[%c1, %c0_3] : memref<10x128xf32, #tpu.memory_space<vmem>>, vector<1x128xf32>
    tpu.vector_store %arg2[%c1, %c0_3], %1 {strides = array<i32>} : memref<10x128xf32, #tpu.memory_space<vmem>>, vector<1x128xf32>,
    %cst_4 = arith.constant 5.000000e-01 : f32
    %10 = vector.broadcast %cst_4 : f32 to vector<1x128xf32>
    %11 = arith.mulf %10, %2 : vector<1x128xf32>
    %c2 = arith.constant 2 : index
    %c0_5 = arith.constant 0 : index
    %12 = vector.load %arg2[%c2, %c0_5] : memref<10x128xf32, #tpu.memory_space<vmem>>, vector<1x128xf32>
    tpu.vector_store %arg2[%c2, %c0_5], %11 {strides = array<i32>} : memref<10x128xf32, #tpu.memory_space<vmem>>, vector<1x128xf32>,
    %13 = arith.mulf %1, %3 : vector<1x128xf32>
    %c3 = arith.constant 3 : index
    %c0_6 = arith.constant 0 : index
    %14 = vector.load %arg2[%c3, %c0_6] : memref<10x128xf32, #tpu.memory_space<vmem>>, vector<1x128xf32>
    tpu.vector_store %arg2[%c3, %c0_6], %13 {strides = array<i32>} : memref<10x128xf32, #tpu.memory_space<vmem>>, vector<1x128xf32>,
    %15 = arith.mulf %1, %5 : vector<1x128xf32>
    %c4 = arith.constant 4 : index
    %c0_7 = arith.constant 0 : index
    %16 = vector.load %arg2[%c4, %c0_7] : memref<10x128xf32, #tpu.memory_space<vmem>>, vector<1x128xf32>
    tpu.vector_store %arg2[%c4, %c0_7], %15 {strides = array<i32>} : memref<10x128xf32, #tpu.memory_space<vmem>>, vector<1x128xf32>,
    %c5 = arith.constant 5 : index
    %c0_8 = arith.constant 0 : index
    %17 = vector.load %arg2[%c5, %c0_8] : memref<10x128xf32, #tpu.memory_space<vmem>>, vector<1x128xf32>
    tpu.vector_store %arg2[%c5, %c0_8], %3 {strides = array<i32>} : memref<10x128xf32, #tpu.memory_space<vmem>>, vector<1x128xf32>,
    %cst_9 = arith.constant 5.000000e-01 : f32
    %18 = vector.broadcast %cst_9 : f32 to vector<1x128xf32>
    %19 = arith.mulf %18, %4 : vector<1x128xf32>
    %c6 = arith.constant 6 : index
    %c0_10 = arith.constant 0 : index
    %20 = vector.load %arg2[%c6, %c0_10] : memref<10x128xf32, #tpu.memory_space<vmem>>, vector<1x128xf32>
    tpu.vector_store %arg2[%c6, %c0_10], %19 {strides = array<i32>} : memref<10x128xf32, #tpu.memory_space<vmem>>, vector<1x128xf32>,
    %21 = arith.mulf %3, %5 : vector<1x128xf32>
    %c7 = arith.constant 7 : index
    %c0_11 = arith.constant 0 : index
    %22 = vector.load %arg2[%c7, %c0_11] : memref<10x128xf32, #tpu.memory_space<vmem>>, vector<1x128xf32>
    tpu.vector_store %arg2[%c7, %c0_11], %21 {strides = array<i32>} : memref<10x128xf32, #tpu.memory_space<vmem>>, vector<1x128xf32>,
    %c8 = arith.constant 8 : index
    %c0_12 = arith.constant 0 : index
    %23 = vector.load %arg2[%c8, %c0_12] : memref<10x128xf32, #tpu.memory_space<vmem>>, vector<1x128xf32>
    tpu.vector_store %arg2[%c8, %c0_12], %5 {strides = array<i32>} : memref<10x128xf32, #tpu.memory_space<vmem>>, vector<1x128xf32>,
    %cst_13 = arith.constant 5.000000e-01 : f32
    %24 = vector.broadcast %cst_13 : f32 to vector<1x128xf32>
    %25 = arith.mulf %24, %6 : vector<1x128xf32>
    %c9 = arith.constant 9 : index
    %c0_14 = arith.constant 0 : index
    %26 = vector.load %arg2[%c9, %c0_14] : memref<10x128xf32, #tpu.memory_space<vmem>>, vector<1x128xf32>
    tpu.vector_store %arg2[%c9, %c0_14], %25 {strides = array<i32>} : memref<10x128xf32, #tpu.memory_space<vmem>>, vector<1x128xf32>,
    return
  }
  func.func @transform_0(%arg0: i32) -> (i32, i32) {
    %c0_i32 = arith.constant 0 : i32
    %c0_i32_0 = arith.constant 0 : i32
    return %c0_i32, %arg0 : i32, i32
  }
  func.func @transform_1(%arg0: i32) -> (i32, i32) {
    %c0_i32 = arith.constant 0 : i32
    %c0_i32_0 = arith.constant 0 : i32
    return %c0_i32, %arg0 : i32, i32
  }
}

</mosaic_0001>

<bundles_post_ra>
// kernel: taylor_forward.1
= control target key start
LH: loop header
LB: loop body
LE: loop exit
PB: predicated region body
PF: predicated region fallthrough
CT: control target
= control target key end

     0   :  { %v33_v0 = vmov 1.0   ;;  %s77_s1 = inlined_call_operand.vmem [shape: f32[10,128], index: 1, kind: output, shape index: {}]   ;;  %s78_s0 = inlined_call_operand.vmem [shape: f32[3,128], index: 0, kind: input, shape index: {}]  }
   0x1   :  { %10 = vst [vmem:[%s77_s1] sm:$0x1] %v33_v0  ;;  %v8_v1 = vld [vmem:[%s78_s0] sm:$0x7] }
   0x2   :  { %11 = vst [vmem:[%s77_s1 + $0x1] sm:$0x1] %v8_v1  ;;  %v9_v2 = vmul.f32 %v8_v1, %v8_v1  ;;  %v15_v3 = vrot.slane %v8_v1, 1  ;;  %v19_v4 = vrot.slane %v8_v1, 2 }
   0x3   :  { %23 = vst [vmem:[%s77_s1 + $0x4] sm:$0x2] %v8_v1 }
   0x4   :  { %26 = vst [vmem:[%s77_s1 + $0x6] sm:$0x4] %v8_v1  ;;  %v12_v5 = vmul.f32 0.5, %v9_v2  ;;  %v17_v6 = vmul.f32 %v15_v3, %v8_v1  ;;  %v21_v7 = vmul.f32 %v19_v4, %v8_v1 }
   0x6   :  { %13 = vst [vmem:[%s77_s1 + $0x2] sm:$0x1] %v12_v5 }
   0x7   :  { %24 = vst [vmem:[%s77_s1 + $0x5] sm:$0x2] %v12_v5 }
   0x8   :  { %27 = vst [vmem:[%s77_s1 + $0x7] sm:$0x4] %v12_v5 }
   0x9   :  { %18 = vst [vmem:[%s77_s1 + $0x3] sm:$0x1] %v17_v6 }
   0xa   :  { %25 = vst [vmem:[%s77_s1 + $0x6] sm:$0x2] %v17_v6 }
   0xb   :  { %22 = vst [vmem:[%s77_s1 + $0x4] sm:$0x1] %v21_v7 }

</bundles_post_ra>
